<compile_context>
chip_gen: v5e
topology: v5e:2x2
jax: 0.10.0
libtpu: 0.0.40
codegen_flags: <defaults>
</compile_context>

<pallas_src>
import math

import jax
import jax.numpy as jnp
from jax.experimental import pallas as pl
from jax.experimental.pallas import tpu as pltpu

_LANES = 128


def _relu_round_kernel(x_ref, o_ref):
    # F.relu then torch.round (round-half-to-even; jnp.round matches since the
    # relu output is non-negative and the dtype is preserved).
    o_ref[...] = jnp.round(jnp.maximum(x_ref[...], 0.0))


def _chip_info():
    """(num_tensorcores, target_block_bytes). Defensive: never raises."""
    kind = ""
    try:
        kind = jax.devices()[0].device_kind.lower()
    except Exception:
        pass

    num_tc = 1
    try:
        info = pltpu.get_tpu_info()
        for attr in ("num_cores", "tensorcore_count", "num_tensorcores",
                     "cores_per_chip"):
            n = getattr(info, attr, None)
            if isinstance(n, int) and n > 0:
                num_tc = n
                break
    except Exception:
        pass

    if "v7" in kind or "tpu7" in kind:
        # 3.2 TB/s HBM: larger blocks amortize the ~0.35 us per-step overhead.
        return max(num_tc, 2), 8 * 1024 * 1024
    # v5e / v6e (single TensorCore): 4 MiB blocks keep step overhead ~5%.
    return num_tc, 4 * 1024 * 1024


def _segmentation_toy_forward_impl(x: jax.Array) -> jax.Array:
    orig_shape = x.shape
    orig_dtype = x.dtype
    total = math.prod(orig_shape) if orig_shape else 1
    itemsize = jnp.dtype(orig_dtype).itemsize

    # dtype-dependent sublane quantum: f32 -> 8, bf16/f16 -> 16, int8/fp8 -> 32.
    quantum = max(8, 32 // itemsize)

    num_tc, target_block_bytes = _chip_info()

    rows = -(-total // _LANES)          # lane-dense slab height
    padded_total = rows * _LANES

    # Target tile height from the per-generation block-byte budget.
    target_rows = max(
        quantum,
        (target_block_bytes // (_LANES * itemsize)) // quantum * quantum,
    )

    if rows <= target_rows:
        if num_tc >= 2 and rows > quantum:
            # Split into >=2 grid steps only when there are 2 TensorCores to
            # actually shard the "parallel" axis across.
            tile_rows = ((-(-rows // 2) + quantum - 1) // quantum) * quantum
        else:
            # Single block covering the whole slab: block dim == full array
            # dim is always a legal block shape (no divisibility requirement).
            tile_rows = rows
    else:
        tile_rows = target_rows

    grid_len = -(-rows // tile_rows)    # partial last block is masked by Pallas

    flat = x.reshape(total)
    if padded_total != total:
        # Only the sub-128 lane remainder (<=127 zeros); round(relu(0)) == 0,
        # and the tail is sliced off below.
        flat = jnp.pad(flat, (0, padded_total - total))
    slab = flat.reshape(rows, _LANES)

    block = (tile_rows, _LANES)
    block_bytes = tile_rows * _LANES * itemsize
    # 2 input + 2 output pipeline buffers + headroom; explicit so v5e's 16 MiB
    # scoped default is not the limiter, capped well under v7x's 64 MiB VMEM.
    vmem_limit = min(48 * 1024 * 1024,
                     max(16 * 1024 * 1024, 4 * block_bytes + 4 * 1024 * 1024))

    out_slab = pl.pallas_call(
        _relu_round_kernel,
        out_shape=jax.ShapeDtypeStruct((rows, _LANES), orig_dtype),
        grid_spec=pltpu.PrefetchScalarGridSpec(
            num_scalar_prefetch=0,
            grid=(grid_len,),
            in_specs=[pl.BlockSpec(block, lambda i: (i, 0))],
            out_specs=pl.BlockSpec(block, lambda i: (i, 0)),
        ),
        compiler_params=pltpu.CompilerParams(
            dimension_semantics=("parallel",),
            vmem_limit_bytes=vmem_limit,
        ),
    )(slab)

    out = out_slab.reshape(padded_total)
    if padded_total != total:
        out = out[:total]
    return out.reshape(orig_shape)


# jit the whole wrapper so the reshapes stay views/bitcasts around pallas_call.
segmentation_toy_forward = jax.jit(_segmentation_toy_forward_impl)


if __name__ == "__main__":
    key = jax.random.PRNGKey(0)

    # Small NCHW input consistent with a segmentation-style model.
    x = jax.random.normal(key, (2, 4, 16, 16), dtype=jnp.float32) * 3.0
    out = jax.block_until_ready(segmentation_toy_forward(x))
    ref = jnp.round(jnp.maximum(x, 0.0))
    assert out.shape == x.shape and out.dtype == x.dtype
    assert bool(jnp.all(out == ref)), "mismatch vs reference (aligned shape)"

    # Unaligned element count exercises the lane-remainder path (105 elements).
    key2 = jax.random.PRNGKey(1)
    y = jax.random.normal(key2, (1, 3, 7, 5), dtype=jnp.float32) * 3.0
    out2 = jax.block_until_ready(segmentation_toy_forward(y))
    ref2 = jnp.round(jnp.maximum(y, 0.0))
    assert out2.shape == y.shape and out2.dtype == y.dtype
    assert bool(jnp.all(out2 == ref2)), "mismatch vs reference (padded shape)"

    print("KERNEL_OK")
</pallas_src>

<mosaic_0001>
module attributes {stable_mosaic.version = 11 : i64} {
  func.func @_relu_round_kernel(%arg0: i32, %arg1: memref<16x128xf32, #tpu.memory_space<vmem>>, %arg2: memref<16x128xf32, #tpu.memory_space<vmem>>) attributes {dimension_semantics = [#tpu.dimension_semantics<parallel>], iteration_bounds = array<i64: 1>, scalar_prefetch = 0 : i64, scratch_operands = 0 : i64, tpu.core_type = #tpu.core_type<tc>, window_params = [{transform_indices = @transform_0, window_bounds = array<i64: 16, 128>}, {transform_indices = @transform_1, window_bounds = array<i64: 16, 128>}]} {
    %c0 = arith.constant 0 : index
    %c0_0 = arith.constant 0 : index
    %0 = vector.load %arg1[%c0, %c0_0] : memref<16x128xf32, #tpu.memory_space<vmem>>, vector<16x128xf32>
    %cst = arith.constant 0.000000e+00 : f32
    %1 = vector.broadcast %cst : f32 to vector<16x128xf32>
    %2 = arith.maximumf %0, %1 : vector<16x128xf32>
    %3 = math.roundeven %2 : vector<16x128xf32>
    %c0_1 = arith.constant 0 : index
    %c0_2 = arith.constant 0 : index
    %4 = vector.load %arg2[%c0_1, %c0_2] : memref<16x128xf32, #tpu.memory_space<vmem>>, vector<16x128xf32>
    tpu.vector_store %arg2[%c0_1, %c0_2], %3 {strides = array<i32>} : memref<16x128xf32, #tpu.memory_space<vmem>>, vector<16x128xf32>,
    return
  }
  func.func @transform_0(%arg0: i32) -> (i32, i32) {
    %c0_i32 = arith.constant 0 : i32
    %c0_i32_0 = arith.constant 0 : i32
    return %arg0, %c0_i32 : i32, i32
  }
  func.func @transform_1(%arg0: i32) -> (i32, i32) {
    %c0_i32 = arith.constant 0 : i32
    %c0_i32_0 = arith.constant 0 : i32
    return %arg0, %c0_i32 : i32, i32
  }
}

</mosaic_0001>

<bundles_post_ra>
// kernel: _segmentation_toy_forward_impl.1
= control target key start
LH: loop header
LB: loop body
LE: loop exit
PB: predicated region body
PF: predicated region fallthrough
CT: control target
= control target key end

     0   :  { %s58_s0 = inlined_call_operand.vmem [shape: f32[16,128], index: 0, kind: input, shape index: {}]   ;;  %s59_s1 = inlined_call_operand.vmem [shape: f32[16,128], index: 1, kind: output, shape index: {}]  }
   0x1   :  { %v8_v0 = vld [vmem:[%s58_s0] sm:$0xff]  ;;  %v9_v1 = vld [vmem:[%s58_s0 + $0x8] sm:$0xff] }
   0x2   :  { %v10_v2 = vmax.f32 %v8_v0, 0.0  ;;  %v11_v3 = vmax.f32 %v9_v1, 0.0 }
   0x4   :  { %v22_v4 = vcvt.f32.s32 %v10_v2  ;;  %v20_v5 = vand.u32 2147483647, %v10_v2  ;;  %v30_v6 = vcvt.f32.s32 %v11_v3  ;;  %v25_v8 = vand.u32 2147483648, %v10_v2 }
   0x5   :  { %v28_v9 = vand.u32 2147483647, %v11_v3  ;;  %v33_v11 = vand.u32 2147483648, %v11_v3 }
   0x6   :  { %v23_v7 = vcvt.s32.f32 %v22_v4  ;;  %v31_v10 = vcvt.s32.f32 %v30_v6  ;;  %vm21_vm0 = vcmp.lt.f32.partialorder %v20_v5, 8388608.0 }
   0x7   :  { %vm29_vm1 = vcmp.lt.f32.partialorder %v28_v9, 8388608.0 }
   0x8   :  { %v24_v12 = vand.u32 2147483647, %v23_v7  ;;  %v32_v13 = vand.u32 2147483647, %v31_v10 }
   0xa   :  { %v26_v14 = vor.u32 %v25_v8, %v24_v12  ;;  %v34_v15 = vor.u32 %v33_v11, %v32_v13 }
   0xc   :  { %v27_v16 = vsel %vm21_vm0, %v26_v14, %v10_v2  ;;  %v35_v17 = vsel %vm29_vm1, %v34_v15, %v11_v3 }
   0xd   :  { %14 = vst [vmem:[%s59_s1] sm:$0xff] %v27_v16 }
   0xe   :  { %15 = vst [vmem:[%s59_s1 + $0x8] sm:$0xff] %v35_v17 }

</bundles_post_ra>
